<compile_context>
chip_gen: v7x
topology: tpu7x:2x2x1
jax: 0.10.0
libtpu: 0.0.40
codegen_flags: <defaults>
</compile_context>

<pallas_src>
import numpy as np

import jax
import jax.numpy as jnp
from jax.experimental import pallas as pl
from jax.experimental.pallas import tpu as pltpu


def _upsample_conv_kernel(x_ref, k_ref, a_ref, o_ref):
    """One batch element per grid step.

    x_ref : (1, H, W*Cin)        VMEM, lane-dense input slab
    k_ref : (W*Cin, 2W*Cout)     VMEM, fused (W-bilinear x 1x1-conv) matrix
    a_ref : (2H, H)              VMEM, H-bilinear matrix
    o_ref : (1, 2H, 2W*Cout)     VMEM, lane-dense output slab
    """
    # W-upsample + channel mix fused into one MXU matmul (pixels*channels on lanes).
    t = jnp.dot(x_ref[0], k_ref[...], preferred_element_type=jnp.float32)
    # H-upsample.
    o_ref[0] = jnp.dot(a_ref[...], t, preferred_element_type=jnp.float32)


def _bilinear2x_matrix(n: int) -> np.ndarray:
    """(2n, n) matrix M such that M @ v is the bilinear x2 upsample of v.

    Built from the general half-pixel formula (align_corners=False):
        s = (r + 0.5)/2 - 0.5,  taps floor(s), floor(s)+1 clipped to [0, n-1].
    Weights are exactly {0.25, 0.75, 1.0}, so f32 is exact.
    """
    m = np.zeros((2 * n, n), dtype=np.float64)
    for r in range(2 * n):
        s = (r + 0.5) / 2.0 - 0.5
        i0 = int(np.floor(s))
        t = s - i0
        m[r, min(max(i0, 0), n - 1)] += 1.0 - t
        m[r, min(max(i0 + 1, 0), n - 1)] += t
    return m.astype(np.float32)


@jax.jit
def upsample_forward(x_nchw, weight):
    """Forward pass of the PyTorch UpSample module.

    x_nchw : (N, Cin, H, W) float32   (Cin = in_c + factor)
    weight : (Cout, Cin, 1, 1) or (Cout, Cin) float32   (Cout = in_c)
    returns: (N, Cout, 2H, 2W) float32
    """
    N, Cin, H, W = x_nchw.shape
    Cout = weight.shape[0]
    wc = weight.reshape(Cout, Cin)

    a_mat = jnp.asarray(_bilinear2x_matrix(H))          # (2H, H)
    b_mat = jnp.asarray(_bilinear2x_matrix(W))          # (2W, W)
    # K[(w*Cin + c), (q*Cout + o)] = B[q, w] * Wc[o, c]  (outer product, no contraction)
    k_mat = jnp.einsum("qw,oc->wcqo", b_mat, wc).reshape(W * Cin, 2 * W * Cout)

    # Layout plumbing (outside the kernel): NCHW -> lane-dense (N, H, W*Cin).
    x_flat = jnp.transpose(x_nchw, (0, 2, 3, 1)).reshape(N, H, W * Cin)

    out_flat = pl.pallas_call(
        _upsample_conv_kernel,
        out_shape=jax.ShapeDtypeStruct((N, 2 * H, 2 * W * Cout), jnp.float32),
        grid_spec=pltpu.PrefetchScalarGridSpec(
            num_scalar_prefetch=0,
            grid=(N,),
            in_specs=[
                pl.BlockSpec((1, H, W * Cin), lambda n: (n, 0, 0)),
                pl.BlockSpec((W * Cin, 2 * W * Cout), lambda n: (0, 0)),
                pl.BlockSpec((2 * H, H), lambda n: (0, 0)),
            ],
            out_specs=pl.BlockSpec((1, 2 * H, 2 * W * Cout), lambda n: (n, 0, 0)),
        ),
        compiler_params=pltpu.CompilerParams(
            dimension_semantics=("parallel",),   # shards the batch across v7x's 2 TCs
        ),
    )(x_flat, k_mat, a_mat)

    # (N, 2H, 2W*Cout) -> (N, 2H, 2W, Cout) -> NCHW.
    return jnp.transpose(out_flat.reshape(N, 2 * H, 2 * W, Cout), (0, 3, 1, 2))


def _reference(x_nchw, wc):
    """Independent oracle (no Pallas, no resize matrices): hand-derived
    0.75/0.25 even/odd phase formula for bilinear x2 with align_corners=False
    (verified against torch.nn.functional.interpolate semantics), applied
    upsample-first then 1x1 conv — i.e. a different derivation and a different
    operation order than the kernel."""
    n, c, h, w = x_nchw.shape
    x = x_nchw
    prev_h = jnp.concatenate([x[:, :, :1, :], x[:, :, :-1, :]], axis=2)
    next_h = jnp.concatenate([x[:, :, 1:, :], x[:, :, -1:, :]], axis=2)
    even_h = 0.75 * x + 0.25 * prev_h
    odd_h = 0.75 * x + 0.25 * next_h
    xh = jnp.stack([even_h, odd_h], axis=3).reshape(n, c, 2 * h, w)
    prev_w = jnp.concatenate([xh[..., :1], xh[..., :-1]], axis=3)
    next_w = jnp.concatenate([xh[..., 1:], xh[..., -1:]], axis=3)
    even_w = 0.75 * xh + 0.25 * prev_w
    odd_w = 0.75 * xh + 0.25 * next_w
    xup = jnp.stack([even_w, odd_w], axis=4).reshape(n, c, 2 * h, 2 * w)
    return jnp.einsum("nchw,oc->nohw", xup, wc,
                      precision=jax.lax.Precision.HIGHEST)


if __name__ == "__main__":
    # Module config: UpSample(in_c=4, factor=4)
    #   input channels  = in_c + factor = 8
    #   output channels = in_c          = 4
    in_c, factor = 4, 4
    N, H, W = 2, 16, 16
    Cin, Cout = in_c + factor, in_c

    key = jax.random.PRNGKey(0)
    kx, kw = jax.random.split(key)

    # PyTorch-layout tensors.
    x = jax.random.normal(kx, (N, Cin, H, W), dtype=jnp.float32)
    weight = 0.1 * jax.random.normal(kw, (Cout, Cin, 1, 1), dtype=jnp.float32)

    y = jax.block_until_ready(upsample_forward(x, weight))
    assert y.shape == (N, Cout, 2 * H, 2 * W), y.shape

    y_ref = _reference(x, weight.reshape(Cout, Cin))
    if not jnp.allclose(y, y_ref, atol=1e-3, rtol=1e-3):
        max_err = float(jnp.max(jnp.abs(y - y_ref)))
        raise AssertionError(f"Pallas result does not match reference (max err {max_err})")

    print("KERNEL_OK")
</pallas_src>

<mosaic_0001>
module attributes {stable_mosaic.version = 11 : i64} {
  func.func @_upsample_conv_kernel(%arg0: i32, %arg1: memref<1x16x128xf32, #tpu.memory_space<vmem>>, %arg2: memref<128x128xf32, #tpu.memory_space<vmem>>, %arg3: memref<32x16xf32, #tpu.memory_space<vmem>>, %arg4: memref<1x32x128xf32, #tpu.memory_space<vmem>>) attributes {dimension_semantics = [#tpu.dimension_semantics<parallel>], iteration_bounds = array<i64: 2>, scalar_prefetch = 0 : i64, scratch_operands = 0 : i64, tpu.core_type = #tpu.core_type<tc>, window_params = [{transform_indices = @transform_0, window_bounds = array<i64: 1, 16, 128>}, {pipeline_mode = #tpu.pipeline_mode<synchronous>, transform_indices = @transform_1, window_bounds = array<i64: 128, 128>}, {pipeline_mode = #tpu.pipeline_mode<synchronous>, transform_indices = @transform_2, window_bounds = array<i64: 32, 16>}, {transform_indices = @transform_3, window_bounds = array<i64: 1, 32, 128>}]} {
    %c0 = arith.constant 0 : index
    %c0_0 = arith.constant 0 : index
    %c0_1 = arith.constant 0 : index
    %0 = vector.load %arg1[%c0, %c0_0, %c0_1] : memref<1x16x128xf32, #tpu.memory_space<vmem>>, vector<1x16x128xf32>
    %1 = vector.shape_cast %0 : vector<1x16x128xf32> to vector<16x128xf32>
    %c0_2 = arith.constant 0 : index
    %c0_3 = arith.constant 0 : index
    %2 = vector.load %arg2[%c0_2, %c0_3] : memref<128x128xf32, #tpu.memory_space<vmem>>, vector<128x128xf32>
    %cst = arith.constant dense<0.000000e+00> : vector<16x128xf32>
    %3 = tpu.matmul %1, %2, %cst {dimension_numbers = #tpu.dot_dimension_numbers<[1], [0], [0], [1], [0, 0, 1, 1], [], []>} : vector<16x128xf32>, vector<128x128xf32>, vector<16x128xf32> -> vector<16x128xf32>
    %c0_4 = arith.constant 0 : index
    %c0_5 = arith.constant 0 : index
    %4 = vector.load %arg3[%c0_4, %c0_5] : memref<32x16xf32, #tpu.memory_space<vmem>>, vector<32x16xf32>
    %cst_6 = arith.constant dense<0.000000e+00> : vector<32x128xf32>
    %5 = tpu.matmul %4, %3, %cst_6 {dimension_numbers = #tpu.dot_dimension_numbers<[1], [0], [0], [1], [0, 0, 1, 1], [], []>} : vector<32x16xf32>, vector<16x128xf32>, vector<32x128xf32> -> vector<32x128xf32>
    %c0_7 = arith.constant 0 : index
    %c0_8 = arith.constant 0 : index
    %c0_9 = arith.constant 0 : index
    %6 = vector.load %arg4[%c0_7, %c0_8, %c0_9] : memref<1x32x128xf32, #tpu.memory_space<vmem>>, vector<1x32x128xf32>
    %7 = vector.shape_cast %6 : vector<1x32x128xf32> to vector<32x128xf32>
    %8 = vector.shape_cast %5 : vector<32x128xf32> to vector<1x32x128xf32>
    tpu.vector_store %arg4[%c0_7, %c0_8, %c0_9], %8 {strides = array<i32>} : memref<1x32x128xf32, #tpu.memory_space<vmem>>, vector<1x32x128xf32>,
    return
  }
  func.func @transform_0(%arg0: i32) -> (i32, i32, i32) {
    %c0_i32 = arith.constant 0 : i32
    %c0_i32_0 = arith.constant 0 : i32
    %c0_i32_1 = arith.constant 0 : i32
    return %arg0, %c0_i32, %c0_i32_0 : i32, i32, i32
  }
  func.func @transform_1(%arg0: i32) -> (i32, i32) {
    %c0_i32 = arith.constant 0 : i32
    %c0_i32_0 = arith.constant 0 : i32
    %c0_i32_1 = arith.constant 0 : i32
    return %c0_i32, %c0_i32_0 : i32, i32
  }
  func.func @transform_2(%arg0: i32) -> (i32, i32) {
    %c0_i32 = arith.constant 0 : i32
    %c0_i32_0 = arith.constant 0 : i32
    %c0_i32_1 = arith.constant 0 : i32
    return %c0_i32, %c0_i32_0 : i32, i32
  }
  func.func @transform_3(%arg0: i32) -> (i32, i32, i32) {
    %c0_i32 = arith.constant 0 : i32
    %c0_i32_0 = arith.constant 0 : i32
    %c0_i32_1 = arith.constant 0 : i32
    return %arg0, %c0_i32, %c0_i32_0 : i32, i32, i32
  }
}

</mosaic_0001>

<bundles_post_ra>
// kernel: upsample_forward.1
= control target key start
LH: loop header
LB: loop body
LE: loop exit
PB: predicated region body
PF: predicated region fallthrough
CT: control target
= control target key end

     0   :  { %s583_s12 = smov 0   ;;  %s668_s0 = inlined_call_operand.vmem [shape: f32[2,16,128], index: 0, kind: input, shape index: {}]   ;;  %s669_s1 = inlined_call_operand.vmem [shape: f32[128,128], index: 1, kind: input, shape index: {}]   ;;  %s670_s2 = inlined_call_operand.vmem [shape: f32[32,16], index: 2, kind: input, shape index: {}]   ;;  %s671_s3 = inlined_call_operand.vmem [shape: f32[2,32,128], index: 3, kind: output, shape index: {}]  }
   0x1 LB: > { %s425_s13 = sadd.s32 4294967295, %s561_s12   ;;  %p429_p0 = scmp.ge.s32.totalorder %s561_s12, 1  ;;  %s561_s12 = sphi %s583_s12, %s13_s12  }
   0x2   : > { %p137_p1 = scmp.lt.s32.totalorder %s561_s12, 3 }
   0x4   : > { %p138_p2 = pnand %p429_p0, %p137_p1 }
   0x5   : > { %v173_v0 = vld [vmem:[%s669_s1] sm:$0xff] (!%p138_p2)  ;;  %v174_v1 = vld [vmem:[%s669_s1 + $0x8] sm:$0xff] (!%p138_p2)  ;;  %v175_v2 = vld [vmem:[%s669_s1 + $0x10] sm:$0xff] (!%p138_p2)  ;;  %p161_p3 = scmp.lt.s32.totalorder (!%p138_p2), %s425_s13, 1  ;;  %vm268_vm0 = vcmask (!%p138_p2), 130048  }
   0x6   : > { %141 = sbr.rel (%p138_p2) target bundleno = 477 (0x1dd), region = 32  ;;  %v511_v3 = vpack.c.bf16 (!%p138_p2), %v174_v1, %v173_v0  ;;  %v176_v4 = vld [vmem:[%s669_s1 + $0x18] sm:$0xff] (!%p138_p2)  ;;  %v177_v6 = vld [vmem:[%s669_s1 + $0x20] sm:$0xff] (!%p138_p2)  ;;  %v178_v7 = vld [vmem:[%s669_s1 + $0x28] sm:$0xff] (!%p138_p2) }
   0x7   : > { %v515_v5 = vpack.c.bf16 (!%p138_p2), %v176_v4, %v175_v2  ;;  %v519_v8 = vpack.c.bf16 (!%p138_p2), %v178_v7, %v177_v6  ;;  %v179_v9 = vld [vmem:[%s669_s1 + $0x30] sm:$0xff] (!%p138_p2)  ;;  %v180_v10 = vld [vmem:[%s669_s1 + $0x38] sm:$0xff] (!%p138_p2)  ;;  %v181_v13 = vld [vmem:[%s669_s1 + $0x40] sm:$0xff] (!%p138_p2) }
   0x8   : > { %512 = vmatprep.subr.bf16.mxu0 (!%p138_p2), %v511_v3  ;;  %v523_v12 = vpack.c.bf16 (!%p138_p2), %v180_v10, %v179_v9  ;;  %v182_v14 = vld [vmem:[%s669_s1 + $0x48] sm:$0xff] (!%p138_p2)  ;;  %v183_v16 = vld [vmem:[%s669_s1 + $0x50] sm:$0xff] (!%p138_p2)  ;;  %v184_v17 = vld [vmem:[%s669_s1 + $0x58] sm:$0xff] (!%p138_p2) }
   0x9   : > { %514 = vmatpush3.bf16.msra.mxu0 (!%p138_p2), %v511_v3  ;;  %v527_v15 = vpack.c.bf16 (!%p138_p2), %v182_v14, %v181_v13  ;;  %v531_v18 = vpack.c.bf16 (!%p138_p2), %v184_v17, %v183_v16  ;;  %v185_v19 = vld [vmem:[%s669_s1 + $0x60] sm:$0xff] (!%p138_p2)  ;;  %v186_v20 = vld [vmem:[%s669_s1 + $0x68] sm:$0xff] (!%p138_p2)  ;;  %v187_v22 = vld [vmem:[%s669_s1 + $0x70] sm:$0xff] (!%p138_p2) }
   0xa   : > { %516 = vmatprep.subr.bf16.mxu0 (!%p138_p2), %v515_v5  ;;  %v535_v21 = vpack.c.bf16 (!%p138_p2), %v186_v20, %v185_v19  ;;  %v188_v23 = vld [vmem:[%s669_s1 + $0x78] sm:$0xff] (!%p138_p2)  ;;  %v264_v26 = vld [vmem:[%s670_s2] sm:$0xff] (!%p138_p2)  ;;  %v265_v30 = vld [vmem:[%s670_s2 + $0x8] sm:$0xff] (!%p138_p2) }
   0xb   : > { %v539_v24 = vpack.c.bf16 (!%p138_p2), %v188_v23, %v187_v22  ;;  %505 = vmatprep.mubr.msk.f32.mxu1 (!%p138_p2), %vm268_vm0, %v264_v26  ;;  %v266_v31 = vld [vmem:[%s670_s2 + $0x10] sm:$0xff] (!%p138_p2)  ;;  %v267_v32 = vld [vmem:[%s670_s2 + $0x18] sm:$0xff] (!%p138_p2) }
   0xd   : > { %s673_s13 = smov (!%p161_p3, %s425_s13), 1  ;;  %518 = vmatpush3.bf16.msra.mxu0 %v515_v5 }
   0xe   : > { %s440_s26 = sshll.u32 %s673_s13, 4  ;;  %520 = vmatprep.subr.bf16.mxu0 %v519_v8  ;;  %s441_s6 = sshll.u32 %s673_s13, 5 }
   0xf   : > { %s615_s29 = scalar_lea.vmem %s668_s0, %s440_s26  ;;  %s170_s9 = scalar_lea.vmem %s671_s3, %s441_s6 }
  0x10   : > { %v171_v11 = vld [vmem:[%s615_s29] sm:$0xff]  ;;  %v172_v25 = vld [vmem:[%s615_s29 + $0x8] sm:$0xff] }
  0x11   : > { %498 = vmatprep.mubr.f32.mxu0 %v171_v11  ;;  %522 = vmatpush3.bf16.msra.mxu0 %v519_v8 }
  0x12   : > { %524 = vmatprep.subr.bf16.mxu0 %v523_v12 }
  0x15   : > { %526 = vmatpush3.bf16.msra.mxu0 %v523_v12 }
  0x16   : > { %528 = vmatprep.subr.bf16.mxu0 %v527_v15 }
  0x19   : > { %530 = vmatpush3.bf16.msra.mxu0 %v527_v15 }
  0x1a   : > { %532 = vmatprep.subr.bf16.mxu0 %v531_v18 }
  0x1d   : > { %534 = vmatpush3.bf16.msra.mxu0 %v531_v18 }
  0x1e   : > { %536 = vmatprep.subr.bf16.mxu0 %v535_v21 }
  0x21   : > { %538 = vmatpush3.bf16.msra.mxu0 %v535_v21 }
  0x22   : > { %540 = vmatprep.subr.bf16.mxu0 %v539_v24 }
  0x25   : > { %542 = vmatpush3.bf16.msra.mxu0 %v539_v24 }
  0x28   : > { %499 = vmatmul.mubr.f32.vlgmr.msra.gmra.mrb[0].mxu0 %v172_v25 }
  0xfb   : > { %v500_v27 = vpop.f32.mrb[0].mxu0 }
  0xfc   : > { %v255_v28 = vpop.f32.mrb[1].mxu0 }
  0xfd   : > { %v543_v29 = vpack.c.bf16 %v500_v27, %v255_v28 }
  0xff   : > { %544 = vmatprep.subr.bf16.mxu1 %v543_v29 }
 0x100   : > { %546 = vmatpush3.bf16.msra.mxu1 %v543_v29 }
 0x103   : > { %506 = vmatmul.mubr.msk.f32.vlgmr.msra.gmra.mrb[0].mxu1 %vm268_vm0, %v265_v30 }
 0x104   : > { %508 = vmatprep.mubr.msk.f32.mxu1 %vm268_vm0, %v266_v31 }
 0x107   : > { %509 = vmatmul.mubr.msk.f32.gmra.mrb[2].mxu1 %vm268_vm0, %v267_v32 }
 0x1d6   : > { %v507_v33 = vpop.f32.mrb[0].mxu1 }
 0x1d7   : > { %367 = vst [vmem:[%s170_s9 + $0x8] sm:$0xff] %v507_v33  ;;  %v347_v34 = vpop.f32.mrb[1].mxu1 }
 0x1d8   : > { %366 = vst [vmem:[%s170_s9] sm:$0xff] %v347_v34 }
 0x1da   : > { %v510_v35 = vpop.f32.mrb[2].mxu1 }
 0x1db   : > { %369 = vst [vmem:[%s170_s9 + $0x18] sm:$0xff] %v510_v35  ;;  %v357_v36 = vpop.f32.mrb[3].mxu1 }
 0x1dc   : > { %368 = vst [vmem:[%s170_s9 + $0x10] sm:$0xff] %v357_v36 }
 0x1dd PF: > { %s13_s12 = sadd.s32 1, %s561_s12  }
 0x1de   : > { %p10_p4 = scmp.ge.s32.totalorder %s13_s12, 4  }
 0x1e0   :  { %12 = sbr.rel (!%p10_p4) target bundleno = 1 (0x1), region = 62 }

</bundles_post_ra>
